<compile_context>
chip_gen: v7x
topology: tpu7x:2x2x1
jax: 0.10.0
libtpu: 0.0.40
codegen_flags: <defaults>
</compile_context>

<pallas_src>
import functools

import jax
import jax.numpy as jnp
from jax import lax
from jax.experimental import pallas as pl
from jax.experimental.pallas import tpu as pltpu


def _discnet_kernel(xa_ref, w1_ref, w2_ref, w3_ref, cols_ref, bl_ref, out_ref,
                    *, inv_TT, chunk, n_chunks, cdt):
    """One batch tile.  Layouts:
      xa_ref  : (D+1, TILE_B) f32   row 0 = t - TT/2, rows 1.. = inp^T
      w1_ref  : (NS, D+1)  cdt
      w2_ref  : (NS, NS)   cdt      already scaled by hh
      w3_ref  : (NS, NS)   cdt      already scaled by hh
      cols_ref: (NS, 4)    f32      columns = [b1, hh*b2, hh*b3, wl]
      bl_ref  : (1, 1)     f32      SMEM scalar
      out_ref : (1, TILE_B) f32
    """
    f32 = jnp.float32

    # Weights / bias columns are loaded once per tile and reused by all chunks.
    w1 = w1_ref[...]
    w2 = w2_ref[...]
    w3 = w3_ref[...]
    cols = cols_ref[...]
    b1c = cols[:, 0:1]
    b2c = cols[:, 1:2]
    b3c = cols[:, 2:3]
    wlc = cols[:, 3:4]
    bl = bl_ref[0, 0]

    def body(c, carry):
        off = pl.multiple_of(c * chunk, chunk)           # chunk is a 128-multiple
        xa = xa_ref[:, pl.ds(off, chunk)]                 # (D+1, CH) f32
        xa0 = xa[0:1, :]                                  # t - TT/2

        # lin1 on the augmented [t_norm ; x] block: one MXU dot, K = D+1.
        z = jnp.dot(w1, xa.astype(cdt), preferred_element_type=f32) + b1c
        h = jnp.tanh(z.astype(cdt))                       # (NS, CH) cdt

        # residual layers (hh already folded into w2/b2 and w3/b3)
        z = h.astype(f32) + jnp.dot(w2, h, preferred_element_type=f32) + b2c
        h = jnp.tanh(z.astype(cdt))
        z = h.astype(f32) + jnp.dot(w3, h, preferred_element_type=f32) + b3c
        h = jnp.tanh(z.astype(cdt))

        # final N=1 projection: VPU multiply + sublane (XLU) reduce, in f32
        o = jnp.sum(h.astype(f32) * wlc, axis=0, keepdims=True) + bl   # (1, CH)

        # convex blend with psi(inp) = sum(inp**2, dim=1); c2 = t/TT
        psi = jnp.sum(xa * xa, axis=0, keepdims=True) - xa0 * xa0
        c2 = xa0 * inv_TT + 0.5
        out_ref[:, pl.ds(off, chunk)] = o + c2 * (psi - o)
        return carry

    # Real (non-unrolled) loop bounds the live vreg working set per chunk.
    lax.fori_loop(0, n_chunks, body, 0)


def _round_up(x, m):
    return ((x + m - 1) // m) * m


def discnet_forward(t, inp, params, *, hh, TT,
                    tile_b=2048, compute_dtype=jnp.float32):
    """t: (B, 1), inp: (B, D); params in PyTorch Linear layout (out, in)."""
    B, D = inp.shape
    NS = params["w2"].shape[0]
    f32 = jnp.float32
    cdt = jnp.bfloat16 if compute_dtype == jnp.bfloat16 else jnp.float32

    # ---- layout plumbing (fuses with the producer under the caller's jit) ---
    # TODO(synk): feed inp already transposed as (D, B) f32 upstream so even
    # this single fused transpose copy disappears.
    t_norm = (t.astype(f32) - 0.5 * float(TT)).reshape(1, B)
    xa = jnp.concatenate([t_norm, inp.astype(f32).T], axis=0)        # (D+1, B)

    w1 = params["w1"].astype(cdt)                                    # (NS, D+1)
    w2h = (float(hh) * params["w2"]).astype(cdt)                     # hh folded
    w3h = (float(hh) * params["w3"]).astype(cdt)
    cols = jnp.concatenate(
        [params["b1"], float(hh) * params["b2"], float(hh) * params["b3"],
         jnp.transpose(params["wl"])], axis=1).astype(f32)           # (NS, 4)
    bl = params["bl"].reshape(1, 1).astype(f32)                      # SMEM

    # ---- batch tiling --------------------------------------------------------
    tile_b = max(128, (int(tile_b) // 128) * 128)        # lane-aligned tile
    b_ceil = _round_up(B, 128)
    tile_b = min(tile_b, b_ceil)
    if b_ceil >= 256:
        # never collapse to a single grid step: keep both v7x TensorCores busy
        tile_b = min(tile_b, max(128, _round_up(b_ceil // 2, 128)))
    n_tiles = -(-B // tile_b)                            # cdiv; last block partial

    # inner chunking keeps the compute working set small at large tile_b
    chunk_target = 512 if cdt == jnp.bfloat16 else 256
    chunk = 128
    for c in (chunk_target, 256, 128):
        if c <= tile_b and tile_b % c == 0:
            chunk = c
            break
    n_chunks = tile_b // chunk

    flops = 2 * B * (NS * (D + 1) + 2 * NS * NS + 2 * NS) + 8 * B
    bytes_accessed = 4 * B * (D + 2) + 4 * NS * (D + 1 + 2 * NS + 4) + 4
    cost = pl.CostEstimate(flops=flops, transcendentals=3 * B * NS,
                           bytes_accessed=bytes_accessed)

    kernel = functools.partial(_discnet_kernel, inv_TT=1.0 / float(TT),
                               chunk=chunk, n_chunks=n_chunks, cdt=cdt)

    out_row = pl.pallas_call(
        kernel,
        out_shape=jax.ShapeDtypeStruct((1, B), f32),
        grid=(n_tiles,),
        in_specs=[
            pl.BlockSpec((D + 1, tile_b), lambda i: (0, i)),       # xa tile
            pl.BlockSpec((NS, D + 1), lambda i: (0, 0)),           # w1
            pl.BlockSpec((NS, NS), lambda i: (0, 0)),              # hh*w2
            pl.BlockSpec((NS, NS), lambda i: (0, 0)),              # hh*w3
            pl.BlockSpec((NS, 4), lambda i: (0, 0)),               # packed cols
            pl.BlockSpec(memory_space=pltpu.MemorySpace.SMEM),     # bl scalar
        ],
        out_specs=pl.BlockSpec((1, tile_b), lambda i: (0, i)),
        compiler_params=pltpu.CompilerParams(
            dimension_semantics=("parallel",)),
        cost_estimate=cost,
    )(xa, w1, w2h, w3h, cols, bl)

    return out_row.reshape(B, 1)


def _default_compute_dtype():
    """bf16 in-kernel activations on TPUs with a bf16 VPU/EUP path; f32 else."""
    try:
        kind = jax.devices()[0].device_kind.lower()
    except Exception:
        return jnp.float32
    if any(s in kind for s in ("v2", "v3", "v4", "v5")):
        return jnp.float32           # no bf16 VPU/EUP path (e.g. v5e)
    if any(s in kind for s in ("v6", "v7", "7x")):
        return jnp.bfloat16
    return jnp.float32


def init_params(key, dim, ns):
    """Deterministic PyTorch-Linear-style init; weights stored as (out, in)."""
    def linear(key, fan_in, fan_out):
        kw, kb = jax.random.split(key)
        bound = 1.0 / jnp.sqrt(fan_in)
        w = jax.random.uniform(kw, (fan_out, fan_in), jnp.float32, -bound, bound)
        b = jax.random.uniform(kb, (fan_out, 1), jnp.float32, -bound, bound)
        return w, b

    k1, k2, k3, k4 = jax.random.split(key, 4)
    w1, b1 = linear(k1, dim + 1, ns)
    w2, b2 = linear(k2, ns, ns)
    w3, b3 = linear(k3, ns, ns)
    wl, bl = linear(k4, ns, 1)
    return {"w1": w1, "b1": b1, "w2": w2, "b2": b2,
            "w3": w3, "b3": b3, "wl": wl, "bl": bl}


def discnet_reference(t, inp, params, *, hh, TT):
    """Pure-JAX reference mirroring the PyTorch forward (weights (out, in))."""
    t_norm = t - TT / 2.0
    h = jnp.concatenate([t_norm, inp], axis=1)
    h = jnp.tanh(h @ params["w1"].T + params["b1"].T)
    h = jnp.tanh(h + hh * (h @ params["w2"].T + params["b2"].T))
    h = jnp.tanh(h + hh * (h @ params["w3"].T + params["b3"].T))
    out = h @ params["wl"].T + params["bl"]            # (B, 1)
    c1 = (TT - t) / TT
    c2 = t / TT
    psi = jnp.sum(inp * inp, axis=1, keepdims=True)
    return c1 * out + c2 * psi


if __name__ == "__main__":
    # B deliberately not a tile multiple: exercises the masked partial last
    # block and a >=2-step (megacore-shardable) grid.
    B, dim, ns = 200, 4, 32
    hh, TT = 0.1, 1.0

    key = jax.random.PRNGKey(0)
    kp, kt, kx = jax.random.split(key, 3)
    params = init_params(kp, dim, ns)
    t = jax.random.uniform(kt, (B, 1), jnp.float32, 0.0, TT)
    inp = jax.random.normal(kx, (B, dim), jnp.float32)

    cdt = _default_compute_dtype()
    fwd = jax.jit(functools.partial(discnet_forward, hh=hh, TT=TT,
                                    tile_b=2048, compute_dtype=cdt))
    out = jax.block_until_ready(fwd(t, inp, params))

    ref = discnet_reference(t, inp, params, hh=hh, TT=TT)
    tol = 1e-4 if cdt == jnp.float32 else 5e-2   # bf16 activations on v6e/v7x
    assert out.shape == (B, 1)
    err = float(jnp.max(jnp.abs(out - ref)))
    assert jnp.allclose(out, ref, atol=tol, rtol=tol), err

    print("KERNEL_OK")
</pallas_src>

<mosaic_0001>
module attributes {stable_mosaic.version = 11 : i64} {
  func.func @_discnet_kernel(%arg0: i32, %arg1: memref<5x128xf32, #tpu.memory_space<vmem>>, %arg2: memref<32x5xf32, #tpu.memory_space<vmem>>, %arg3: memref<32x32xf32, #tpu.memory_space<vmem>>, %arg4: memref<32x32xf32, #tpu.memory_space<vmem>>, %arg5: memref<32x4xf32, #tpu.memory_space<vmem>>, %arg6: memref<1x1xf32, #tpu.memory_space<smem>>, %arg7: memref<1x128xf32, #tpu.memory_space<vmem>>) attributes {dimension_semantics = [#tpu.dimension_semantics<parallel>], iteration_bounds = array<i64: 2>, scalar_prefetch = 0 : i64, scratch_operands = 0 : i64, tpu.core_type = #tpu.core_type<tc>, window_params = [{transform_indices = @transform_0, window_bounds = array<i64: 5, 128>}, {pipeline_mode = #tpu.pipeline_mode<synchronous>, transform_indices = @transform_1, window_bounds = array<i64: 32, 5>}, {pipeline_mode = #tpu.pipeline_mode<synchronous>, transform_indices = @transform_2, window_bounds = array<i64: 32, 32>}, {pipeline_mode = #tpu.pipeline_mode<synchronous>, transform_indices = @transform_3, window_bounds = array<i64: 32, 32>}, {pipeline_mode = #tpu.pipeline_mode<synchronous>, transform_indices = @transform_4, window_bounds = array<i64: 32, 4>}, {transform_indices = @transform_5, window_bounds = array<i64: 1, 1>}, {transform_indices = @transform_6, window_bounds = array<i64: 1, 128>}]} {
    %c0 = arith.constant 0 : index
    %c0_0 = arith.constant 0 : index
    %0 = vector.load %arg2[%c0, %c0_0] : memref<32x5xf32, #tpu.memory_space<vmem>>, vector<32x5xf32>
    %c0_1 = arith.constant 0 : index
    %c0_2 = arith.constant 0 : index
    %1 = vector.load %arg3[%c0_1, %c0_2] : memref<32x32xf32, #tpu.memory_space<vmem>>, vector<32x32xf32>
    %c0_3 = arith.constant 0 : index
    %c0_4 = arith.constant 0 : index
    %2 = vector.load %arg4[%c0_3, %c0_4] : memref<32x32xf32, #tpu.memory_space<vmem>>, vector<32x32xf32>
    %c0_5 = arith.constant 0 : index
    %c0_6 = arith.constant 0 : index
    %3 = vector.load %arg5[%c0_5, %c0_6] : memref<32x4xf32, #tpu.memory_space<vmem>>, vector<32x4xf32>
    %4 = vector.extract_strided_slice %3 {offsets = [0, 0], sizes = [32, 1], strides = [1, 1]} : vector<32x4xf32> to vector<32x1xf32>
    %5 = vector.extract_strided_slice %3 {offsets = [0, 1], sizes = [32, 1], strides = [1, 1]} : vector<32x4xf32> to vector<32x1xf32>
    %6 = vector.extract_strided_slice %3 {offsets = [0, 2], sizes = [32, 1], strides = [1, 1]} : vector<32x4xf32> to vector<32x1xf32>
    %7 = vector.extract_strided_slice %3 {offsets = [0, 3], sizes = [32, 1], strides = [1, 1]} : vector<32x4xf32> to vector<32x1xf32>
    %c0_7 = arith.constant 0 : index
    %c0_8 = arith.constant 0 : index
    %8 = memref.load %arg6[%c0_7, %c0_8] : memref<1x1xf32, #tpu.memory_space<smem>>
    %c0_i32 = arith.constant 0 : i32
    %c128_i32 = arith.constant 128 : i32
    %9 = arith.muli %c0_i32, %c128_i32 : i32
    %10 = tpu.assume_multiple %9, 128 : i32
    %c0_9 = arith.constant 0 : index
    %11 = arith.index_cast %10 : i32 to index
    %12 = vector.load %arg1[%c0_9, %11] : memref<5x128xf32, #tpu.memory_space<vmem>>, vector<5x128xf32>
    %13 = vector.extract_strided_slice %12 {offsets = [0, 0], sizes = [1, 128], strides = [1, 1]} : vector<5x128xf32> to vector<1x128xf32>
    %cst = arith.constant dense<0.000000e+00> : vector<32x128xf32>
    %14 = tpu.matmul %0, %12, %cst {dimension_numbers = #tpu.dot_dimension_numbers<[1], [0], [0], [1], [0, 0, 1, 1], [], []>} : vector<32x5xf32>, vector<5x128xf32>, vector<32x128xf32> -> vector<32x128xf32>
    %15 = vector.broadcast %4 : vector<32x1xf32> to vector<32x128xf32>
    %16 = arith.addf %14, %15 : vector<32x128xf32>
    %17 = math.tanh %16 : vector<32x128xf32>
    %cst_10 = arith.constant dense<0.000000e+00> : vector<32x128xf32>
    %18 = tpu.matmul %1, %17, %cst_10 {dimension_numbers = #tpu.dot_dimension_numbers<[1], [0], [0], [1], [0, 0, 1, 1], [], []>} : vector<32x32xf32>, vector<32x128xf32>, vector<32x128xf32> -> vector<32x128xf32>
    %19 = arith.addf %17, %18 : vector<32x128xf32>
    %20 = vector.broadcast %5 : vector<32x1xf32> to vector<32x128xf32>
    %21 = arith.addf %19, %20 : vector<32x128xf32>
    %22 = math.tanh %21 : vector<32x128xf32>
    %cst_11 = arith.constant dense<0.000000e+00> : vector<32x128xf32>
    %23 = tpu.matmul %2, %22, %cst_11 {dimension_numbers = #tpu.dot_dimension_numbers<[1], [0], [0], [1], [0, 0, 1, 1], [], []>} : vector<32x32xf32>, vector<32x128xf32>, vector<32x128xf32> -> vector<32x128xf32>
    %24 = arith.addf %22, %23 : vector<32x128xf32>
    %25 = vector.broadcast %6 : vector<32x1xf32> to vector<32x128xf32>
    %26 = arith.addf %24, %25 : vector<32x128xf32>
    %27 = math.tanh %26 : vector<32x128xf32>
    %28 = vector.broadcast %7 : vector<32x1xf32> to vector<32x128xf32>
    %29 = arith.mulf %27, %28 : vector<32x128xf32>
    %cst_12 = arith.constant dense<0.000000e+00> : vector<128xf32>
    %30 = vector.multi_reduction <add>, %29, %cst_12 [0] : vector<32x128xf32> to vector<128xf32>
    %31 = vector.shape_cast %30 : vector<128xf32> to vector<1x128xf32>
    %32 = vector.broadcast %8 : f32 to vector<1x128xf32>
    %33 = arith.addf %31, %32 : vector<1x128xf32>
    %34 = arith.mulf %12, %12 : vector<5x128xf32>
    %cst_13 = arith.constant dense<0.000000e+00> : vector<128xf32>
    %35 = vector.multi_reduction <add>, %34, %cst_13 [0] : vector<5x128xf32> to vector<128xf32>
    %36 = vector.shape_cast %35 : vector<128xf32> to vector<1x128xf32>
    %37 = arith.mulf %13, %13 : vector<1x128xf32>
    %38 = arith.subf %36, %37 : vector<1x128xf32>
    %cst_14 = arith.constant 1.000000e+00 : f32
    %39 = vector.broadcast %cst_14 : f32 to vector<1x128xf32>
    %40 = arith.mulf %13, %39 : vector<1x128xf32>
    %cst_15 = arith.constant 5.000000e-01 : f32
    %41 = vector.broadcast %cst_15 : f32 to vector<1x128xf32>
    %42 = arith.addf %40, %41 : vector<1x128xf32>
    %43 = arith.subf %38, %33 : vector<1x128xf32>
    %44 = arith.mulf %42, %43 : vector<1x128xf32>
    %45 = arith.addf %33, %44 : vector<1x128xf32>
    %c0_16 = arith.constant 0 : index
    %46 = arith.index_cast %10 : i32 to index
    %47 = vector.load %arg7[%c0_16, %46] : memref<1x128xf32, #tpu.memory_space<vmem>>, vector<1x128xf32>
    tpu.vector_store %arg7[%c0_16, %46], %45 {strides = array<i32>} : memref<1x128xf32, #tpu.memory_space<vmem>>, vector<1x128xf32>,
    %c1_i32 = arith.constant 1 : i32
    return
  }
  func.func @transform_0(%arg0: i32) -> (i32, i32) {
    %c0_i32 = arith.constant 0 : i32
    %c0_i32_0 = arith.constant 0 : i32
    return %c0_i32, %arg0 : i32, i32
  }
  func.func @transform_1(%arg0: i32) -> (i32, i32) {
    %c0_i32 = arith.constant 0 : i32
    %c0_i32_0 = arith.constant 0 : i32
    %c0_i32_1 = arith.constant 0 : i32
    return %c0_i32, %c0_i32_0 : i32, i32
  }
  func.func @transform_2(%arg0: i32) -> (i32, i32) {
    %c0_i32 = arith.constant 0 : i32
    %c0_i32_0 = arith.constant 0 : i32
    %c0_i32_1 = arith.constant 0 : i32
    return %c0_i32, %c0_i32_0 : i32, i32
  }
  func.func @transform_3(%arg0: i32) -> (i32, i32) {
    %c0_i32 = arith.constant 0 : i32
    %c0_i32_0 = arith.constant 0 : i32
    %c0_i32_1 = arith.constant 0 : i32
    return %c0_i32, %c0_i32_0 : i32, i32
  }
  func.func @transform_4(%arg0: i32) -> (i32, i32) {
    %c0_i32 = arith.constant 0 : i32
    %c0_i32_0 = arith.constant 0 : i32
    %c0_i32_1 = arith.constant 0 : i32
    return %c0_i32, %c0_i32_0 : i32, i32
  }
  func.func @transform_5(%arg0: i32) -> (i32, i32) {
    %c0_i32 = arith.constant 0 : i32
    %c0_i32_0 = arith.constant 0 : i32
    %c0_i32_1 = arith.constant 0 : i32
    return %c0_i32, %c0_i32_0 : i32, i32
  }
  func.func @transform_6(%arg0: i32) -> (i32, i32) {
    %c0_i32 = arith.constant 0 : i32
    %c0_i32_0 = arith.constant 0 : i32
    return %c0_i32, %arg0 : i32, i32
  }
}

</mosaic_0001>

<bundles_post_ra>
// kernel: discnet_forward.1
= control target key start
LH: loop header
LB: loop body
LE: loop exit
PB: predicated region body
PF: predicated region fallthrough
CT: control target
= control target key end

     0   :  { %s1232_s0 = inlined_call_operand.vmem [shape: f32[5,200], index: 0, kind: input, shape index: {}]   ;;  %s1233_s1 = inlined_call_operand.vmem [shape: f32[32,5], index: 1, kind: input, shape index: {}]   ;;  %s1234_s2 = inlined_call_operand.vmem [shape: f32[32,32], index: 2, kind: input, shape index: {}]   ;;  %s1235_s3 = inlined_call_operand.vmem [shape: f32[32,32], index: 3, kind: input, shape index: {}]   ;;  %s1236_s4 = inlined_call_operand.vmem [shape: f32[32,4], index: 4, kind: input, shape index: {}]   ;;  %s1237_s5 = inlined_call_operand.<no memory space> [shape: f32[1,1], index: 5, kind: input, shape index: {}]   ;;  %s1238_s6 = inlined_call_operand.hbm [shape: f32[1,200], index: 6, kind: output, shape index: {}]  }
   0x1   :  { %11 = sst [smem:[#allocation2]] %s1237_s5 }
   0x2   :  { %12 = vsyncpa [#allocation4], 0 }
   0x3   :  { %14 = vsyncpa [#allocation4 + $0x1], 0  ;;  %s1031_s23 = smov 0   ;;  %s1033_s24 = smov 0  }
   0x4   :  { %s1035_s25 = smov 0   ;;  %s1037_s26 = smov 0  }
   0x5 LB: > { %s1052_s5 = sadd.s32 4294967295, %s986_s26   ;;  %s755_s27 = sadd.s32 4294967294, %s986_s26   ;;  %s986_s26 = sphi %s1037_s26, %s1244_s26   ;;  %s982_s25 = sphi %s1035_s25, %s1243_s25   ;;  %s978_s24 = sphi %s1033_s24, %s1242_s24   ;;  %s974_s23 = sphi %s1031_s23, %s1241_s23  }
   0x6   : > { %s1056_s28 = sadd.s32 1, %s986_s26   ;;  %s158_s29 = sadd.s32 1, %s982_s25 }
   0x7   : > { %s155_s30 = ssub.s32 %s986_s26, %s1056_s28  ;;  %p168_p0 = scmp.ne.s32.totalorder %s982_s25, %s978_s24 }
   0x8   : > { %p156_p1 = scmp.eq.s32.totalorder %s155_s30, 0  ;;  %p169_p2 = scmp.eq.s32.totalorder %s1052_s5, 1 }
   0x9   : > { %p174_p3 = scmp.ne.s32.totalorder %s978_s24, %s974_s23  ;;  %p175_p4 = scmp.eq.s32.totalorder %s755_s27, 1 }
   0xa   : > { %s1067_s7 = scalar_select %p156_p1, %s982_s25, %s158_s29  }
   0xb   : > { %p1069_p5 = por %p169_p2, %p168_p0  ;;  %p1073_p6 = por %p175_p4, %p174_p3 }
   0xc   : > { %p758_p7 = scmp.ge.s32.totalorder %s986_s26, 1  ;;  %p215_p8 = scmp.lt.s32.totalorder %s986_s26, 3 }
   0xe   : > { %p216_p9 = pnand %p758_p7, %p215_p8 }
   0xf   : > { %p243_p10 = scmp.lt.s32.totalorder (!%p216_p9), %s1052_s5, 1  ;;  %v247_v0 = vld [vmem:[%s1233_s1] sm:$0xff] (!%p216_p9)  ;;  %vm285_vm0 = vcmask (!%p216_p9), 39936   ;;  %v1092_v2 = vld [vmem:[%s1236_s4 + $0x10] sm:$0xff] (!%p216_p9)  ;;  %v988_v3 = vmov (!%p216_p9), 0   ;;  %vm298_vm1 = vcmask (!%p216_p9), 1044480  }
  0x10   : > { %219 = sbr.rel (%p216_p9) target bundleno = 776 (0x308), region = 44  ;;  %799 = vmatprep.mubr.msk.f32.mxu0 (!%p216_p9), %vm285_vm0, %v247_v0  ;;  %v1087_v1 = vld [vmem:[%s1236_s4] sm:$0xff] (!%p216_p9)  ;;  %892 = vset.pattern.permute.xlu0 (!%p216_p9), %v988_v3  ;;  %v1100_v4 = vld [vmem:[%s1236_s4 + $0x8] sm:$0xff] (!%p216_p9)  ;;  %v1108_v5 = vld [vmem:[%s1236_s4 + $0x18] sm:$0xff] (!%p216_p9)  ;;  %vm391_vm2 = vcmask (!%p216_p9), 261120   ;;  %v989_v20 = vmov (!%p216_p9), 1  }
  0x11   : > { %893 = vset.pattern.permute.xlu1 (!%p216_p9), %v988_v3  ;;  %267 = vperm.xlu0 (!%p216_p9), %892, %v1087_v1   ;;  %v248_v7 = vld [vmem:[%s1233_s1 + $0x8] sm:$0xff] (!%p216_p9)  ;;  %v249_v9 = vld [vmem:[%s1233_s1 + $0x10] sm:$0xff] (!%p216_p9)  ;;  %v250_v12 = vld [vmem:[%s1233_s1 + $0x18] sm:$0xff] (!%p216_p9)  ;;  %v990_v43 = vmov (!%p216_p9), 2   ;;  %v991_v44 = vmov (!%p216_p9), 3   ;;  %s263_s15 = sld [smem:[#allocation2]] (!%p216_p9) }
  0x12   : > { %277 = vperm.xlu1 (!%p216_p9), %893, %v1092_v2   ;;  %v251_v19 = vld [vmem:[%s1234_s2] sm:$0xff] (!%p216_p9)  ;;  %v252_v39 = vld [vmem:[%s1234_s2 + $0x8] sm:$0xff] (!%p216_p9)  ;;  %v253_v40 = vld [vmem:[%s1234_s2 + $0x10] sm:$0xff] (!%p216_p9) }
  0x13   : > { %813 = vmatprep.mubr.msk.f32.mxu1 (!%p216_p9), %vm391_vm2, %v251_v19  ;;  %v254_v41 = vld [vmem:[%s1234_s2 + $0x18] sm:$0xff] (!%p216_p9)  ;;  %v255_v42 = vld [vmem:[%s1235_s3] sm:$0xff] (!%p216_p9)  ;;  %v256_v3 = vld [vmem:[%s1235_s3 + $0x8] sm:$0xff] (!%p216_p9) }
  0x15   : > { %272 = vperm.xlu0 (!%p216_p9), %892, %v1100_v4  }
  0x16   : > { %282 = vperm.xlu1 (!%p216_p9), %893, %v1108_v5  }
  0x17   : > { %s244_s16 = scalar_select %p243_p10, %s1052_s5, 1 }
  0x19   : > { %s759_s17 = sshll.u32 %s244_s16, 3  ;;  %894 = vset.pattern.permute.xlu0 %v989_v20  ;;  %s241_s16 = sand.u32 1, %s978_s24  }
  0x1a   : > { %s246_s22 = scalar_lea.vmem %s1232_s0, %s759_s17  ;;  %895 = vset.pattern.permute.xlu1 %v989_v20  ;;  %494 = vperm.xlu0 %894, %v1087_v1   ;;  %s773_s17 = sshll.u32 %s1052_s5, 4 }
  0x1b   : > { %v1110_v6 = vld [vmem:[%s246_s22] sm:$0x1f]  ;;  %498 = vperm.xlu1 %895, %v1100_v4   ;;  %s242_s18 = scalar_lea.vmem [#allocation3], %s241_s16  ;;  %s1190_s22 = scalar_lea.hbm %s1238_s6, %s773_s17 }
  0x1c   : > { %797 = vmatprep.subr.msk.mxu0 %vm298_vm1, %v1110_v6  ;;  %v1118_v8 = vmul.f32 %v1110_v6, %v1110_v6  ;;  %s700_s19 = sshll.u32 %s242_s18, 4  ;;  %s688_s27 = scalar_lea.sflag [#allocation4], %s241_s16  ;;  %s1192_s19 = int_to_ptr.vmem [resolvable:$true] %s700_s19 }
  0x1d   : > { %798 = vmatpush3.msk.msra.mxu0 %vm298_vm1, %v1110_v6  ;;  %s924_s29 = scalar_lea.vmem %s1192_s19, 16  ;;  %s992_s5 = smov [#allocation3]  }
  0x1e   : > { %v674_v10 = vsel %vm298_vm1, %v1118_v8, 0.0  ;;  %800 = vmatmul.mubr.msk.f32.vlgmr.msra.gmra.mrb[0].mxu0 %vm285_vm0, %v248_v7  ;;  %506 = vperm.xlu0 %894, %v1108_v5   ;;  %p925_p11 = scmp.ne.s32.totalorder %s1192_s19, %s924_s29  ;;  %s928_s30 = sshll.u32 %s992_s5, 4  ;;  %s929_s30 = int_to_ptr.vmem [resolvable:$false] %s928_s30 }
  0x1f   : > { %v675_v11 = vrot.slane %v674_v10, 4  ;;  %802 = vmatprep.mubr.msk.f32.mxu0 %vm285_vm0, %v249_v9  ;;  %502 = vperm.xlu1 %895, %v1092_v2   ;;  %s930_s10 = scalar_lea.vmem %s929_s30, 32  ;;  %p931_p0 = scmp.lt.s32.totalorder %s1192_s19, %s929_s30 }
  0x20   : > { %p926_p12 = pnand %p925_p11, %p1069_p5  ;;  %p932_p1 = scmp.lt.s32.totalorder %s930_s10, %s924_s29 }
  0x21   : > { %v676_v13 = vadd.f32 %v675_v11, %v674_v10 }
  0x22   : > { %803 = vmatmul.mubr.msk.f32.gmra.mrb[2].mxu0 %vm285_vm0, %v250_v12  ;;  %897 = vset.pattern.permute.xlu0 %v990_v43  ;;  %p927_p13 = pneg %p926_p12  ;;  %p933_p2 = por %p932_p1, %p931_p0 }
  0x23   : > { %v677_v14 = vrot.slane %v676_v13, 2  ;;  %827 = vmatprep.mubr.msk.f32.mxu0 %vm391_vm2, %v255_v42  ;;  %896 = vset.pattern.permute.xlu1 %v990_v43 }
  0x24   : > { %619 = vperm.xlu1 %896, %v1087_v1   ;;  %623 = vperm.xlu0 %897, %v1100_v4   ;;  %p934_p3 = pnand %p933_p2, %p927_p13 }
  0x25   : > { %v678_v15 = vadd.f32 %v677_v14, %v676_v13 }
  0x27   : > { %v679_v16 = vrot.slane %v678_v15, 1 }
  0x28   : > { %627 = vperm.xlu1 %896, %v1092_v2   ;;  %898 = vset.pattern.permute.xlu0 %v991_v44 }
  0x29   : > { %v1133_v17 = vadd.f32 %v679_v16, %v678_v15  ;;  %643 = vperm.xlu0 %898, %v1087_v1  }
  0x2b   : > { %v681_v18 = vsub.f32 %v1133_v17, %v1118_v8 }
  0x2c   : > { %631 = vperm.xlu1 %896, %v1108_v5  }
  0x2d   : > { %655 = vperm.xlu0 %898, %v1108_v5   ;;  %v258_v5 = vld [vmem:[%s1235_s3 + $0x18] sm:$0xff] }
  0x30   : > { %899 = vset.pattern.permute.xlu1 %v991_v44 }
  0x31   : > { %647 = vperm.xlu1 %899, %v1100_v4   ;;  %v257_v4 = vld [vmem:[%s1235_s3 + $0x10] sm:$0xff] }
  0x35   : > { %651 = vperm.xlu1 %899, %v1092_v2  }
  0x90   : > { %v268_v21 = vpop.permute.xlu0 %267 }
  0x91   : > { %v278_v22 = vpop.permute.xlu1 %277 }
  0x94   : > { %v273_v23 = vpop.permute.xlu0 %272 }
  0x95   : > { %v283_v28 = vpop.permute.xlu1 %282 }
  0x99   : > { %v495_v45 = vpop.permute.xlu0 %494 }
  0x9a   : > { %v499_v47 = vpop.permute.xlu1 %498 }
  0x9d   : > { %v507_v56 = vpop.permute.xlu0 %506 }
  0x9e   : > { %v503_v58 = vpop.permute.xlu1 %502 }
  0xa3   : > { %v620_v7 = vpop.permute.xlu1 %619  ;;  %v624_v11 = vpop.permute.xlu0 %623 }
  0xa7   : > { %v628_v9 = vpop.permute.xlu1 %627 }
  0xf1   : > { %v801_v24 = vpop.f32.mrb[0].mxu0 }
  0xf2   : > { %v374_v25 = vadd.f32 %v801_v24, %v273_v23  ;;  %v368_v26 = vpop.f32.mrb[1].mxu0 }
  0xf3   : > { %v369_v27 = vadd.f32 %v368_v26, %v268_v21 }
  0xf4   : > { %900 = vtanh.f32 %v374_v25 }
  0xf5   : > { %902 = vtanh.f32 %v369_v27  ;;  %v804_v29 = vpop.f32.mrb[2].mxu0  ;;  %v644_v27 = vpop.permute.xlu0 %643 }
  0xf6   : > { %v384_v30 = vadd.f32 %v804_v29, %v283_v28  ;;  %v378_v31 = vpop.f32.mrb[3].mxu0 }
  0xf7   : > { %v379_v32 = vadd.f32 %v378_v31, %v278_v22  ;;  %v632_v22 = vpop.permute.xlu1 %631 }
  0xf8   : > { %904 = vtanh.f32 %v384_v30 }
  0xf9   : > { %906 = vtanh.f32 %v379_v32 }
  0xfb   : > { %v648_v26 = vpop.permute.xlu1 %647 }
  0xfe   : > { %v901_v33 = vpop.eup %900 }
  0xff   : > { %v903_v34 = vpop.eup %902 }
 0x100   : > { %v833_v35 = vpack.c.bf16 %v901_v33, %v903_v34 }
 0x102   : > { %v905_v36 = vpop.eup %904  ;;  %834 = vmatprep.subr.bf16.mxu1 %v833_v35 }
 0x103   : > { %v907_v37 = vpop.eup %906  ;;  %836 = vmatpush3.bf16.msra.mxu1 %v833_v35  ;;  %v652_v35 = vpop.permute.xlu1 %651 }
 0x104   : > { %v837_v38 = vpack.c.bf16 %v905_v36, %v907_v37 }
 0x106   : > { %838 = vmatprep.subr.bf16.mxu1 %v837_v38 }
 0x107   : > { %840 = vmatpush3.bf16.msra.mxu1 %v837_v38 }
 0x10a   : > { %814 = vmatmul.mubr.msk.f32.vlgmr.msra.gmra.mrb[0].mxu1 %vm391_vm2, %v252_v39 }
 0x10b   : > { %816 = vmatprep.mubr.msk.f32.mxu1 %vm391_vm2, %v253_v40 }
 0x10e   : > { %817 = vmatmul.mubr.msk.f32.gmra.mrb[2].mxu1 %vm391_vm2, %v254_v41 }
 0x1dd   : > { %v815_v46 = vpop.f32.mrb[0].mxu1 }
 0x1de   : > { %v490_v48 = vadd.f32 %v901_v33, %v815_v46  ;;  %v470_v49 = vpop.f32.mrb[1].mxu1  ;;  %v671_v46 = vstv %s263_s15 }
 0x1df   : > { %v489_v50 = vadd.f32 %v903_v34, %v470_v49 }
 0x1e0   : > { %v510_v51 = vadd.f32 %v499_v47, %v490_v48  ;;  %v682_v48 = vadd.f32 0.5, %v1110_v6 }
 0x1e1   : > { %v509_v52 = vadd.f32 %v495_v45, %v489_v50  ;;  %v818_v53 = vpop.f32.mrb[2].mxu1 }
 0x1e2   : > { %908 = vtanh.f32 %v510_v51  ;;  %v492_v54 = vadd.f32 %v905_v36, %v818_v53  ;;  %v480_v55 = vpop.f32.mrb[3].mxu1  ;;  %v656_v36 = vpop.permute.xlu0 %655 }
 0x1e3   : > { %910 = vtanh.f32 %v509_v52  ;;  %v491_v57 = vadd.f32 %v907_v37, %v480_v55 }
 0x1e4   : > { %v512_v59 = vadd.f32 %v507_v56, %v492_v54 }
 0x1e5   : > { %v511_v60 = vadd.f32 %v503_v58, %v491_v57 }
 0x1e6   : > { %912 = vtanh.f32 %v512_v59 }
 0x1e7   : > { %914 = vtanh.f32 %v511_v60 }
 0x1ec   : > { %v909_v61 = vpop.eup %908 }
 0x1ed   : > { %v911_v62 = vpop.eup %910 }
 0x1ee   : > { %v841_v63 = vpack.c.bf16 %v909_v61, %v911_v62 }
 0x1f0   : > { %v913_v0 = vpop.eup %912  ;;  %842 = vmatprep.subr.bf16.mxu0 %v841_v63 }
 0x1f1   : > { %v915_v1 = vpop.eup %914  ;;  %844 = vmatpush3.bf16.msra.mxu0 %v841_v63 }
 0x1f2   : > { %v845_v2 = vpack.c.bf16 %v913_v0, %v915_v1 }
 0x1f4   : > { %846 = vmatprep.subr.bf16.mxu0 %v845_v2 }
 0x1f5   : > { %848 = vmatpush3.bf16.msra.mxu0 %v845_v2 }
 0x1f8   : > { %828 = vmatmul.mubr.msk.f32.vlgmr.msra.gmra.mrb[4].mxu0 %vm391_vm2, %v256_v3 }
 0x1f9   : > { %830 = vmatprep.mubr.msk.f32.mxu0 %vm391_vm2, %v257_v4 }
 0x1fc   : > { %831 = vmatmul.mubr.msk.f32.gmra.mrb[6].mxu0 %vm391_vm2, %v258_v5 }
 0x2cb   : > { %v829_v10 = vpop.f32.mrb[4].mxu0 }
 0x2cc   : > { %v615_v12 = vadd.f32 %v909_v61, %v829_v10  ;;  %v595_v13 = vpop.f32.mrb[5].mxu0 }
 0x2cd   : > { %v614_v14 = vadd.f32 %v911_v62, %v595_v13 }
 0x2ce   : > { %v635_v15 = vadd.f32 %v624_v11, %v615_v12 }
 0x2cf   : > { %v634_v16 = vadd.f32 %v620_v7, %v614_v14  ;;  %v832_v19 = vpop.f32.mrb[6].mxu0 }
 0x2d0   : > { %916 = vtanh.f32 %v635_v15  ;;  %v617_v20 = vadd.f32 %v913_v0, %v832_v19  ;;  %v605_v21 = vpop.f32.mrb[7].mxu0 }
 0x2d1   : > { %918 = vtanh.f32 %v634_v16  ;;  %v616_v23 = vadd.f32 %v915_v1, %v605_v21 }
 0x2d2   : > { %v637_v24 = vadd.f32 %v632_v22, %v617_v20 }
 0x2d3   : > { %v636_v25 = vadd.f32 %v628_v9, %v616_v23 }
 0x2d4   : > { %920 = vtanh.f32 %v637_v24 }
 0x2d5   : > { %922 = vtanh.f32 %v636_v25 }
 0x2da   : > { %v917_v28 = vpop.eup %916 }
 0x2db   : > { %v919_v29 = vpop.eup %918  ;;  %v659_v30 = vmul.f32 %v917_v28, %v648_v26 }
 0x2dc   : > { %v658_v31 = vmul.f32 %v919_v29, %v644_v27 }
 0x2de   : > { %v921_v32 = vpop.eup %920  ;;  %v662_v33 = vadd.f32 %v659_v30, %v658_v31 }
 0x2df   : > { %v923_v34 = vpop.eup %922  ;;  %v661_v39 = vmul.f32 %v921_v32, %v656_v36 }
 0x2e0   : > { %v660_v37 = vmul.f32 %v923_v34, %v652_v35 }
 0x2e2   : > { %v663_v38 = vadd.f32 %v662_v33, %v660_v37 }
 0x2e4   : > { %v664_v40 = vadd.f32 %v663_v38, %v661_v39 }
 0x2e6   : > { %v665_v41 = vrot.slane %v664_v40, 4 }
 0x2e8   : > { %v666_v42 = vadd.f32 %v665_v41, %v664_v40 }
 0x2ea   : > { %v667_v43 = vrot.slane %v666_v42, 2 }
 0x2ec   : > { %v668_v44 = vadd.f32 %v667_v43, %v666_v42 }
 0x2ee   : > { %v669_v45 = vrot.slane %v668_v44, 1 }
 0x2f0   : > { %v670_v47 = vadd.f32 %v669_v45, %v668_v44 }
 0x2f2   : > { %v672_v49 = vadd.f32 %v671_v46, %v670_v47 }
 0x2f4   : > { %v683_v50 = vsub.f32 %v681_v18, %v672_v49 }
 0x2f6   : > { %v684_v51 = vmul.f32 %v683_v50, %v682_v48 }
 0x2f8   : > { %v685_v52 = vadd.f32 %v684_v51, %v672_v49 }
 0x2fa   : > { %686 = vst [vmem:[%s242_s18] sm:$0x1] %v685_v52 }
 0x2fb   : > { %937 = shalt.err (!%p934_p3)
}
 0x2fc   : > { %s938_s11 = scalar_lea.hbm %s1190_s22, 16  ;;  %s942_s14 = scalar_lea.hbm %s1238_s6, 32 }
 0x2fd   : > { %p939_p4 = scmp.ne.s32.totalorder %s1190_s22, %s938_s11  ;;  %p943_p9 = scmp.lt.u32.totalorder %s1190_s22, %s1238_s6 }
 0x2fe   : > { %p944_p10 = scmp.lt.u32.totalorder %s942_s14, %s938_s11  ;;  %p946_p12 = scmp.lt.u32.totalorder %s938_s11, %s1190_s22 }
 0x2ff   : > { %p940_p7 = pnand %p939_p4, %p1069_p5 }
 0x300   : > { %p945_p11 = por %p944_p10, %p943_p9 }
 0x301   : > { %p941_p8 = pneg %p940_p7 }
 0x302   : > { %p947_p13 = por %p946_p12, %p945_p11 }
 0x304   : > { %p948_p0 = pnand %p947_p13, %p941_p8 }
 0x306   : > { %951 = shalt.err (!%p948_p0)
}
 0x307   : > { %849 = dma.vmem_to_hbm [thread:$0]  (%p1069_p5), %s1192_s19, 16, %s1190_s22, %s688_s27  }
 0x308 PF: > { %p855_p1 = scmp.ge.s32.totalorder %s986_s26, 2  ;;  %s712_s17 = sand.u32 1, %s974_s23  }
 0x309   : > { %s713_s18 = scalar_lea.sflag [#allocation4], %s712_s17 }
 0x30a   : > { %p852_p2 = pnand %p855_p1, %p1073_p6 }
 0x30c   : > { %969 = dma.done.wait (!%p852_p2), %s713_s18, 16  }
 0x30d   : > { %971 = vsyncadd (!%p852_p2), %s713_s18, 4294967280  ;;  %p17_p3 = scmp.ge.s32.totalorder %s1056_s28, 4   ;;  %s1241_s23 = smov %s978_s24 }
 0x30e   : > { %s1242_s24 = smov %s982_s25  ;;  %s1243_s25 = smov %s1067_s7 }
 0x30f   : > { %s1244_s26 = smov %s1056_s28  ;;  %19 = sbr.rel (!%p17_p3) target bundleno = 5 (0x5), region = 79 }
 0x316   :  { %717 = vsyncpa [#allocation4], 1 }
 0x317   :  { %719 = vsyncpa [#allocation4 + $0x1], 1 }

</bundles_post_ra>
